<compile_context>
chip_gen: v5e
topology: v5e:2x2
jax: 0.10.0
libtpu: 0.0.40
codegen_flags: <defaults>
</compile_context>

<pallas_src>
import functools

import jax
import jax.numpy as jnp
from jax.experimental import pallas as pl
from jax.experimental.pallas import tpu as pltpu


def mlp_kernel(x_ref, w1_ref, b1_ref, w2_ref, b2_ref, w3t_ref, b3_ref, o_ref):
    """Fused 3-layer MLP for one batch tile.

    Only layer 1 touches the big x stream (runs in x's dtype, f32 MXU
    accumulation).  Layers 2/3 are tiny (16x16, 16x1) and stay in f32.
    The last layer is evaluated as W3^T contracted against h2's hidden axis,
    producing a lane-dense (1, batch_tile) result so the output store is a
    full-width vector store.
    """
    x = x_ref[...]

    h1 = jnp.dot(x, w1_ref[...], preferred_element_type=jnp.float32) + b1_ref[...]
    h1 = jnp.maximum(h1, 0.0)

    h2 = jnp.dot(h1, w2_ref[...], preferred_element_type=jnp.float32) + b2_ref[...]
    h2 = jnp.maximum(h2, 0.0)

    # (1, H2) . (batch_tile, H2)^T -> (1, batch_tile)   (lane-dense output row)
    # If a Mosaic dump ever shows the implied h2 relayout binding the
    # vector-extended slot, compute h2 @ w3 into a (tile, 1) scratch and do a
    # single relayout instead -- but keep the (1, tile) lane-dense store.
    out_t = jax.lax.dot_general(
        w3t_ref[...], h2,
        dimension_numbers=(((1,), (1,)), ((), ())),
        preferred_element_type=jnp.float32) + b3_ref[...]

    o_ref[...] = out_t.astype(o_ref.dtype)


def _round_up(n, m):
    return ((n + m - 1) // m) * m


_TILE_ALIGN = 256            # multiple of (8, 128); packs full MXU passes
_X_STREAM_BUDGET = 4 << 20   # bytes for the DOUBLE-buffered, lane-padded x blocks


def _choose_batch_tile(batch, num_features, itemsize, requested=None):
    if requested is not None:
        if requested <= 0 or requested % 128 != 0:
            raise ValueError(
                f"batch_tile must be a positive multiple of 128, got {requested}")
        return requested
    # VMEM pads the minor dim to 128 lanes, so the real footprint of one x
    # block is tile * round_up(F, 128) * itemsize bytes (4x raw bytes at F=32).
    padded_row_bytes = _round_up(num_features, 128) * itemsize
    tile = (_X_STREAM_BUDGET // (2 * padded_row_bytes)) // _TILE_ALIGN * _TILE_ALIGN
    tile = max(_TILE_ALIGN, tile)
    # Don't pad tiny batches past one aligned block.
    tile = min(tile, _round_up(batch, _TILE_ALIGN))
    # v7x megacore: keep >= 2 grid steps whenever the batch allows it so the
    # "parallel" batch axis shards across both TensorCores.
    if batch > _TILE_ALIGN:
        tile = min(tile, _round_up((batch + 1) // 2, _TILE_ALIGN))
    return tile


@functools.partial(jax.jit, static_argnames=("batch_tile",))
def toxin_mlp_forward(x, w1, b1, w2, b2, w3, b3, *, batch_tile=None):
    """Pallas forward pass.  x: (B, F) f32 or bf16 -> (B, 1) float32."""
    B, F = x.shape
    H1 = w1.shape[1]          # 16
    H2 = w2.shape[1]          # 16
    O = w3.shape[1]           # 1

    # bf16 fast path only when x is already bf16 upstream (a wrapper-side
    # f32->bf16 cast would be an extra full HBM pass over x: a net loss).
    if x.dtype == jnp.bfloat16:
        w1 = w1.astype(jnp.bfloat16)        # <3 KB, free
    else:
        x = x.astype(jnp.float32)
        w1 = w1.astype(jnp.float32)
    # Layers 2/3 always f32 (tiny; protects the regression output).
    w2 = w2.astype(jnp.float32)
    b1 = b1.reshape(1, H1).astype(jnp.float32)
    b2 = b2.reshape(1, H2).astype(jnp.float32)
    w3t = w3.astype(jnp.float32).T          # (O, H2) for the lane-dense output
    b3c = b3.reshape(O, 1).astype(jnp.float32)

    tile = _choose_batch_tile(B, F, x.dtype.itemsize, batch_tile)
    num_tiles = pl.cdiv(B, tile)

    out_t = pl.pallas_call(
        mlp_kernel,
        out_shape=jax.ShapeDtypeStruct((O, B), jnp.float32),
        grid=(num_tiles,),
        in_specs=[
            # x streamed over the batch; Pallas masks the partial tail block,
            # so no wrapper-side jnp.pad (no extra HBM pass over x).
            # pipeline_mode=pl.Buffered(3) is a cheap knob here if boundary DMA
            # latency ever shows up exposed.
            pl.BlockSpec((tile, F), lambda i: (i, 0)),
            pl.BlockSpec((F, H1), lambda i: (0, 0)),     # W1 (resident)
            pl.BlockSpec((1, H1), lambda i: (0, 0)),     # b1
            pl.BlockSpec((H1, H2), lambda i: (0, 0)),    # W2
            pl.BlockSpec((1, H2), lambda i: (0, 0)),     # b2
            pl.BlockSpec((O, H2), lambda i: (0, 0)),     # W3^T
            pl.BlockSpec((O, 1), lambda i: (0, 0)),      # b3
        ],
        # Lane-dense (1, tile) row chunks of the (1, B) output.
        out_specs=pl.BlockSpec((O, tile), lambda i: (0, i)),
        compiler_params=pltpu.CompilerParams(
            dimension_semantics=("parallel",),
            vmem_limit_bytes=32 * 1024 * 1024),
    )(x, w1, b1, w2, b2, w3t, b3c)

    # (O, B) -> (B, O); trivial for O == 1.
    return out_t.T


def init_params(key, num_features):
    """Deterministic init matching PyTorch nn.Linear shapes.
    PyTorch stores weight as (out, in); we keep the transposed (in, out) form.
    Uses uniform(-1/sqrt(fan_in), 1/sqrt(fan_in)) like torch's default."""
    def linear(k, fan_in, fan_out):
        kw, kb = jax.random.split(k)
        bound = 1.0 / jnp.sqrt(fan_in)
        w = jax.random.uniform(kw, (fan_in, fan_out), jnp.float32, -bound, bound)
        b = jax.random.uniform(kb, (1, fan_out), jnp.float32, -bound, bound)
        return w, b

    k1, k2, k3 = jax.random.split(key, 3)
    w1, b1 = linear(k1, num_features, 16)
    w2, b2 = linear(k2, 16, 16)
    w3, b3 = linear(k3, 16, 1)
    return w1, b1, w2, b2, w3, b3


def reference_forward(x, w1, b1, w2, b2, w3, b3):
    h1 = jnp.maximum(x @ w1 + b1, 0.0)
    h2 = jnp.maximum(h1 @ w2 + b2, 0.0)
    return h2 @ w3 + b3


if __name__ == "__main__":
    key = jax.random.PRNGKey(0)
    kx, kx2, kp = jax.random.split(key, 3)

    num_features = 32
    params = init_params(kp, num_features)

    # Tolerances account for TPU default matmul precision (bf16 MXU passes) in
    # either the kernel or the XLA reference.
    TOL = dict(atol=1e-2, rtol=1e-2)

    # Small batch: single grid step with a partial block (exercises boundary
    # masking on both the x read and the output store).
    x = jax.random.normal(kx, (16, num_features), jnp.float32)
    out = jax.block_until_ready(toxin_mlp_forward(x, *params))
    ref = reference_forward(x, *params)
    assert out.shape == (16, 1), out.shape
    assert jnp.allclose(out, ref, **TOL), "mismatch vs reference (small batch)"

    # Batch that is not a multiple of the tile: multiple grid steps + masked tail.
    x2 = jax.random.normal(kx2, (300, num_features), jnp.float32)
    out2 = jax.block_until_ready(toxin_mlp_forward(x2, *params))
    ref2 = reference_forward(x2, *params)
    assert out2.shape == (300, 1), out2.shape
    assert jnp.allclose(out2, ref2, **TOL), "mismatch vs reference (partial tail)"

    # bf16 fast path: only taken because x already arrives in bf16.
    out_bf16 = jax.block_until_ready(
        toxin_mlp_forward(x2.astype(jnp.bfloat16), *params))
    assert out_bf16.shape == (300, 1), out_bf16.shape
    assert jnp.allclose(out_bf16, ref2, atol=5e-2, rtol=5e-2), "bf16 path mismatch"

    print("KERNEL_OK")
</pallas_src>

<mosaic_0001>
module attributes {stable_mosaic.version = 11 : i64} {
  func.func @mlp_kernel(%arg0: i32, %arg1: memref<256x32xf32, #tpu.memory_space<vmem>>, %arg2: memref<32x16xf32, #tpu.memory_space<vmem>>, %arg3: memref<1x16xf32, #tpu.memory_space<vmem>>, %arg4: memref<16x16xf32, #tpu.memory_space<vmem>>, %arg5: memref<1x16xf32, #tpu.memory_space<vmem>>, %arg6: memref<1x16xf32, #tpu.memory_space<vmem>>, %arg7: memref<1x1xf32, #tpu.memory_space<vmem>>, %arg8: memref<1x256xf32, #tpu.memory_space<vmem>>) attributes {dimension_semantics = [#tpu.dimension_semantics<parallel>], iteration_bounds = array<i64: 1>, scalar_prefetch = 0 : i64, scratch_operands = 0 : i64, tpu.core_type = #tpu.core_type<tc>, window_params = [{transform_indices = @transform_0, window_bounds = array<i64: 256, 32>}, {pipeline_mode = #tpu.pipeline_mode<synchronous>, transform_indices = @transform_1, window_bounds = array<i64: 32, 16>}, {pipeline_mode = #tpu.pipeline_mode<synchronous>, transform_indices = @transform_2, window_bounds = array<i64: 1, 16>}, {pipeline_mode = #tpu.pipeline_mode<synchronous>, transform_indices = @transform_3, window_bounds = array<i64: 16, 16>}, {pipeline_mode = #tpu.pipeline_mode<synchronous>, transform_indices = @transform_4, window_bounds = array<i64: 1, 16>}, {pipeline_mode = #tpu.pipeline_mode<synchronous>, transform_indices = @transform_5, window_bounds = array<i64: 1, 16>}, {pipeline_mode = #tpu.pipeline_mode<synchronous>, transform_indices = @transform_6, window_bounds = array<i64: 1, 1>}, {transform_indices = @transform_7, window_bounds = array<i64: 1, 256>}]} {
    %c0 = arith.constant 0 : index
    %c0_0 = arith.constant 0 : index
    %0 = vector.load %arg1[%c0, %c0_0] : memref<256x32xf32, #tpu.memory_space<vmem>>, vector<256x32xf32>
    %c0_1 = arith.constant 0 : index
    %c0_2 = arith.constant 0 : index
    %1 = vector.load %arg2[%c0_1, %c0_2] : memref<32x16xf32, #tpu.memory_space<vmem>>, vector<32x16xf32>
    %cst = arith.constant dense<0.000000e+00> : vector<256x16xf32>
    %2 = tpu.matmul %0, %1, %cst {dimension_numbers = #tpu.dot_dimension_numbers<[1], [0], [0], [1], [0, 0, 1, 1], [], []>} : vector<256x32xf32>, vector<32x16xf32>, vector<256x16xf32> -> vector<256x16xf32>
    %c0_3 = arith.constant 0 : index
    %c0_4 = arith.constant 0 : index
    %3 = vector.load %arg3[%c0_3, %c0_4] : memref<1x16xf32, #tpu.memory_space<vmem>>, vector<1x16xf32>
    %4 = vector.broadcast %3 : vector<1x16xf32> to vector<256x16xf32>
    %5 = arith.addf %2, %4 : vector<256x16xf32>
    %cst_5 = arith.constant 0.000000e+00 : f32
    %6 = vector.broadcast %cst_5 : f32 to vector<256x16xf32>
    %7 = arith.maximumf %5, %6 : vector<256x16xf32>
    %c0_6 = arith.constant 0 : index
    %c0_7 = arith.constant 0 : index
    %8 = vector.load %arg4[%c0_6, %c0_7] : memref<16x16xf32, #tpu.memory_space<vmem>>, vector<16x16xf32>
    %cst_8 = arith.constant dense<0.000000e+00> : vector<256x16xf32>
    %9 = tpu.matmul %7, %8, %cst_8 {dimension_numbers = #tpu.dot_dimension_numbers<[1], [0], [0], [1], [0, 0, 1, 1], [], []>} : vector<256x16xf32>, vector<16x16xf32>, vector<256x16xf32> -> vector<256x16xf32>
    %c0_9 = arith.constant 0 : index
    %c0_10 = arith.constant 0 : index
    %10 = vector.load %arg5[%c0_9, %c0_10] : memref<1x16xf32, #tpu.memory_space<vmem>>, vector<1x16xf32>
    %11 = vector.broadcast %10 : vector<1x16xf32> to vector<256x16xf32>
    %12 = arith.addf %9, %11 : vector<256x16xf32>
    %cst_11 = arith.constant 0.000000e+00 : f32
    %13 = vector.broadcast %cst_11 : f32 to vector<256x16xf32>
    %14 = arith.maximumf %12, %13 : vector<256x16xf32>
    %c0_12 = arith.constant 0 : index
    %c0_13 = arith.constant 0 : index
    %15 = vector.load %arg6[%c0_12, %c0_13] : memref<1x16xf32, #tpu.memory_space<vmem>>, vector<1x16xf32>
    %cst_14 = arith.constant dense<0.000000e+00> : vector<1x256xf32>
    %16 = tpu.matmul %15, %14, %cst_14 {dimension_numbers = #tpu.dot_dimension_numbers<[1], [1], [0], [0], [0, 0, 1, 0], [], []>} : vector<1x16xf32>, vector<256x16xf32>, vector<1x256xf32> -> vector<1x256xf32>
    %c0_15 = arith.constant 0 : index
    %c0_16 = arith.constant 0 : index
    %17 = vector.load %arg7[%c0_15, %c0_16] : memref<1x1xf32, #tpu.memory_space<vmem>>, vector<1x1xf32>
    %18 = vector.broadcast %17 : vector<1x1xf32> to vector<1x256xf32>
    %19 = arith.addf %16, %18 : vector<1x256xf32>
    %c0_17 = arith.constant 0 : index
    %c0_18 = arith.constant 0 : index
    %20 = vector.load %arg8[%c0_17, %c0_18] : memref<1x256xf32, #tpu.memory_space<vmem>>, vector<1x256xf32>
    tpu.vector_store %arg8[%c0_17, %c0_18], %19 {strides = array<i32>} : memref<1x256xf32, #tpu.memory_space<vmem>>, vector<1x256xf32>,
    return
  }
  func.func @transform_0(%arg0: i32) -> (i32, i32) {
    %c0_i32 = arith.constant 0 : i32
    %c0_i32_0 = arith.constant 0 : i32
    return %arg0, %c0_i32 : i32, i32
  }
  func.func @transform_1(%arg0: i32) -> (i32, i32) {
    %c0_i32 = arith.constant 0 : i32
    %c0_i32_0 = arith.constant 0 : i32
    %c0_i32_1 = arith.constant 0 : i32
    return %c0_i32, %c0_i32_0 : i32, i32
  }
  func.func @transform_2(%arg0: i32) -> (i32, i32) {
    %c0_i32 = arith.constant 0 : i32
    %c0_i32_0 = arith.constant 0 : i32
    %c0_i32_1 = arith.constant 0 : i32
    return %c0_i32, %c0_i32_0 : i32, i32
  }
  func.func @transform_3(%arg0: i32) -> (i32, i32) {
    %c0_i32 = arith.constant 0 : i32
    %c0_i32_0 = arith.constant 0 : i32
    %c0_i32_1 = arith.constant 0 : i32
    return %c0_i32, %c0_i32_0 : i32, i32
  }
  func.func @transform_4(%arg0: i32) -> (i32, i32) {
    %c0_i32 = arith.constant 0 : i32
    %c0_i32_0 = arith.constant 0 : i32
    %c0_i32_1 = arith.constant 0 : i32
    return %c0_i32, %c0_i32_0 : i32, i32
  }
  func.func @transform_5(%arg0: i32) -> (i32, i32) {
    %c0_i32 = arith.constant 0 : i32
    %c0_i32_0 = arith.constant 0 : i32
    %c0_i32_1 = arith.constant 0 : i32
    return %c0_i32, %c0_i32_0 : i32, i32
  }
  func.func @transform_6(%arg0: i32) -> (i32, i32) {
    %c0_i32 = arith.constant 0 : i32
    %c0_i32_0 = arith.constant 0 : i32
    %c0_i32_1 = arith.constant 0 : i32
    return %c0_i32, %c0_i32_0 : i32, i32
  }
  func.func @transform_7(%arg0: i32) -> (i32, i32) {
    %c0_i32 = arith.constant 0 : i32
    %c0_i32_0 = arith.constant 0 : i32
    return %c0_i32, %arg0 : i32, i32
  }
}

</mosaic_0001>

<bundles_post_ra>
// kernel: toxin_mlp_forward.1
= control target key start
LH: loop header
LB: loop body
LE: loop exit
PB: predicated region body
PF: predicated region fallthrough
CT: control target
= control target key end

     0   :  { %s1241_s0 = inlined_call_operand.vmem [shape: f32[16,32], index: 0, kind: input, shape index: {}]   ;;  %s1242_s1 = inlined_call_operand.vmem [shape: f32[32,16], index: 1, kind: input, shape index: {}]   ;;  %s1243_s2 = inlined_call_operand.vmem [shape: f32[1,16], index: 2, kind: input, shape index: {}]   ;;  %s1244_s3 = inlined_call_operand.vmem [shape: f32[16,16], index: 3, kind: input, shape index: {}]   ;;  %s1245_s4 = inlined_call_operand.vmem [shape: f32[1,16], index: 4, kind: input, shape index: {}]   ;;  %s1246_s5 = inlined_call_operand.vmem [shape: f32[1,16], index: 5, kind: input, shape index: {}]   ;;  %s1247_s6 = inlined_call_operand.<no memory space> [shape: f32[1,1], index: 6, kind: input, shape index: {}]   ;;  %s1248_s7 = inlined_call_operand.hbm [shape: f32[1,16], index: 7, kind: output, shape index: {}]  }
   0x1   :  { %v12_v0 = vstv %s1247_s6 }
   0x2   :  { %13 = vst [vmem:[#allocation2] sm:$0x1] %v12_v0 }
   0x3   :  { %14 = vsyncpa [#allocation4], 0  ;;  %v64_v1 = vld [vmem:[%s1242_s1 + $0x18] sm:$0xff]  ;;  %v63_v2 = vld [vmem:[%s1242_s1 + $0x10] sm:$0xff]  ;;  %vm69_vm0 = vcmask 261120   ;;  %vm317_vm1 = vcmask 130048  }
   0x4   :  { %178 = vmatpush.msra.mxu0 %v64_v1  ;;  %831 = vmatpush.msra.mxu2 %v64_v1  ;;  %v62_v3 = vld [vmem:[%s1242_s1 + $0x8] sm:$0xff]  ;;  %v61_v4 = vld [vmem:[%s1242_s1] sm:$0xff]  ;;  %v31_v7 = vld [vmem:[%s1241_s0 + $0x10] sm:$0xff]  ;;  %vm709_vm2 = vcmask 1040384  }
   0x5   :  { %v29_v5 = vld [vmem:[%s1241_s0] sm:$0xff]  ;;  %v30_v6 = vld [vmem:[%s1241_s0 + $0x8] sm:$0xff]  ;;  %v32_v8 = vld [vmem:[%s1241_s0 + $0x18] sm:$0xff] }
   0x6   :  { %179 = vmatpush.msra.mxu0 %v63_v2  ;;  %832 = vmatpush.msra.mxu2 %v63_v2  ;;  %v33_v9 = vld [vmem:[%s1241_s0 + $0x20] sm:$0xff]  ;;  %v34_v10 = vld [vmem:[%s1241_s0 + $0x28] sm:$0xff]  ;;  %v35_v11 = vld [vmem:[%s1241_s0 + $0x30] sm:$0xff] }
   0x7   :  { %v36_v12 = vld [vmem:[%s1241_s0 + $0x38] sm:$0xff]  ;;  %v37_v13 = vld [vmem:[%s1241_s0 + $0x40] sm:$0xff]  ;;  %v38_v14 = vld [vmem:[%s1241_s0 + $0x48] sm:$0xff] }
   0x8   :  { %180 = vmatpush.msra.mxu0 %v62_v3  ;;  %833 = vmatpush.msra.mxu2 %v62_v3  ;;  %v39_v15 = vld [vmem:[%s1241_s0 + $0x50] sm:$0xff]  ;;  %v40_v16 = vld [vmem:[%s1241_s0 + $0x58] sm:$0xff]  ;;  %v41_v17 = vld [vmem:[%s1241_s0 + $0x60] sm:$0xff] }
   0x9   :  { %v312_v18 = vld [vmem:[%s1244_s3 + $0x8] sm:$0xff]  ;;  %v311_v19 = vld [vmem:[%s1244_s3] sm:$0xff]  ;;  %v43_v21 = vld [vmem:[%s1241_s0 + $0x70] sm:$0xff] }
   0xa   :  { %181 = vmatpush.msra.mxu0 %v61_v4  ;;  %834 = vmatpush.msra.mxu2 %v61_v4  ;;  %v42_v20 = vld [vmem:[%s1241_s0 + $0x68] sm:$0xff]  ;;  %v48_v22 = vld [vmem:[%s1241_s0 + $0x98] sm:$0xff]  ;;  %v49_v24 = vld [vmem:[%s1241_s0 + $0xa0] sm:$0xff] }
   0xb   :  { %733 = vmatmul.msk.f32.vlgmr.msra.gmra.mxu0 %vm69_vm0, %v29_v5  ;;  %428 = vmatpush.msra.mxu1 %v312_v18  ;;  %v44_v23 = vld [vmem:[%s1241_s0 + $0x78] sm:$0xff]  ;;  %v1006_v25 = vld [vmem:[%s1243_s2] ss:$0 sm:$0xff]  ;;  %v50_v30 = vld [vmem:[%s1241_s0 + $0xa8] sm:$0xff] }
   0xc   :  { %835 = vmatpush.msra.mxu3 %v312_v18  ;;  %752 = vmatmul.msk.f32.vlgmr.msra.gmra.mxu2 %vm69_vm0, %v48_v22  ;;  %v45_v27 = vld [vmem:[%s1241_s0 + $0x80] sm:$0xff]  ;;  %v46_v32 = vld [vmem:[%s1241_s0 + $0x88] sm:$0xff]  ;;  %v51_v35 = vld [vmem:[%s1241_s0 + $0xb0] sm:$0xff] }
   0xd   :  { %429 = vmatpush.msra.mxu1 %v311_v19  ;;  %v47_v37 = vld [vmem:[%s1241_s0 + $0x90] sm:$0xff]  ;;  %v52_v40 = vld [vmem:[%s1241_s0 + $0xb8] sm:$0xff]  ;;  %v53_v44 = vld [vmem:[%s1241_s0 + $0xc0] sm:$0xff] }
   0xe   :  { %836 = vmatpush.msra.mxu3 %v311_v19  ;;  %v54_v48 = vld [vmem:[%s1241_s0 + $0xc8] sm:$0xff]  ;;  %v55_v52 = vld [vmem:[%s1241_s0 + $0xd0] sm:$0xff]  ;;  %v56_v56 = vld [vmem:[%s1241_s0 + $0xd8] sm:$0xff] }
   0xf   :  { %v57_v60 = vld [vmem:[%s1241_s0 + $0xe0] sm:$0xff]  ;;  %v58_v0 = vld [vmem:[%s1241_s0 + $0xe8] sm:$0xff]  ;;  %v59_v4 = vld [vmem:[%s1241_s0 + $0xf0] sm:$0xff] }
  0x13   :  { %734 = vmatmul.msk.f32.gmra.mxu0 %vm69_vm0, %v30_v6 }
  0x14   :  { %753 = vmatmul.msk.f32.gmra.mxu2 %vm69_vm0, %v49_v24 }
  0x1b   :  { %735 = vmatmul.msk.f32.gmra.mxu0 %vm69_vm0, %v31_v7 }
  0x1c   :  { %754 = vmatmul.msk.f32.gmra.mxu2 %vm69_vm0, %v50_v30 }
  0x23   :  { %736 = vmatmul.msk.f32.gmra.mxu0 %vm69_vm0, %v32_v8  ;;  %v60_v8 = vld [vmem:[%s1241_s0 + $0xf8] sm:$0xff] }
  0x24   :  { %755 = vmatmul.msk.f32.gmra.mxu2 %vm69_vm0, %v51_v35 }
  0x2b   :  { %737 = vmatmul.msk.f32.gmra.mxu0 %vm69_vm0, %v33_v9 }
  0x2c   :  { %756 = vmatmul.msk.f32.gmra.mxu2 %vm69_vm0, %v52_v40 }
  0x33   :  { %738 = vmatmul.msk.f32.gmra.mxu0 %vm69_vm0, %v34_v10 }
  0x34   :  { %757 = vmatmul.msk.f32.gmra.mxu2 %vm69_vm0, %v53_v44 }
  0x3b   :  { %739 = vmatmul.msk.f32.gmra.mxu0 %vm69_vm0, %v35_v11 }
  0x3c   :  { %758 = vmatmul.msk.f32.gmra.mxu2 %vm69_vm0, %v54_v48 }
  0x43   :  { %740 = vmatmul.msk.f32.gmra.mxu0 %vm69_vm0, %v36_v12 }
  0x44   :  { %759 = vmatmul.msk.f32.gmra.mxu2 %vm69_vm0, %v55_v52 }
  0x4b   :  { %741 = vmatmul.msk.f32.gmra.mxu0 %vm69_vm0, %v37_v13 }
  0x4c   :  { %760 = vmatmul.msk.f32.gmra.mxu2 %vm69_vm0, %v56_v56 }
  0x53   :  { %742 = vmatmul.msk.f32.gmra.mxu0 %vm69_vm0, %v38_v14 }
  0x54   :  { %761 = vmatmul.msk.f32.gmra.mxu2 %vm69_vm0, %v57_v60 }
  0x5b   :  { %743 = vmatmul.msk.f32.gmra.mxu0 %vm69_vm0, %v39_v15 }
  0x5c   :  { %762 = vmatmul.msk.f32.gmra.mxu2 %vm69_vm0, %v58_v0 }
  0x63   :  { %744 = vmatmul.msk.f32.gmra.mxu0 %vm69_vm0, %v40_v16 }
  0x64   :  { %763 = vmatmul.msk.f32.gmra.mxu2 %vm69_vm0, %v59_v4 }
  0x6b   :  { %745 = vmatmul.msk.f32.gmra.mxu0 %vm69_vm0, %v41_v17 }
  0x6c   :  { %764 = vmatmul.msk.f32.gmra.mxu2 %vm69_vm0, %v60_v8 }
  0x73   :  { %746 = vmatmul.msk.f32.gmra.mxu0 %vm69_vm0, %v42_v20 }
  0x7b   :  { %747 = vmatmul.msk.f32.gmra.mxu0 %vm69_vm0, %v43_v21 }
  0x83   :  { %748 = vmatmul.msk.f32.gmra.mxu0 %vm69_vm0, %v44_v23 }
  0x88   :  { %v183_v26 = vpop.f32.mrf.mxu0 }
  0x89   :  { %v184_v28 = vadd.f32 %v1006_v25, %v183_v26 }
  0x8b   :  { %v279_v29 = vmax.f32 %v184_v28, 0.0  ;;  %749 = vmatmul.msk.f32.gmra.mxu0 %vm69_vm0, %v45_v27 }
  0x8d   :  { %765 = vmatmul.msk.f32.vlgmr.msra.gmra.mxu1 %vm317_vm1, %v279_v29 }
  0x8f   :  { %v240_v23 = vpop.f32.mrf.mxu2 }
  0x90   :  { %v186_v31 = vpop.f32.mrf.mxu0  ;;  %v241_v40 = vadd.f32 %v1006_v25, %v240_v23  ;;  %v1146_v23 = vld [vmem:[%s1245_s4] ss:$0 sm:$0xff] }
  0x91   :  { %v187_v33 = vadd.f32 %v1006_v25, %v186_v31 }
  0x93   :  { %v280_v34 = vmax.f32 %v187_v33, 0.0  ;;  %750 = vmatmul.msk.f32.gmra.mxu0 %vm69_vm0, %v46_v32 }
  0x95   :  { %766 = vmatmul.msk.f32.gmra.mxu1 %vm317_vm1, %v280_v34 }
  0x97   :  { %v243_v30 = vpop.f32.mrf.mxu2 }
  0x98   :  { %v189_v36 = vpop.f32.mrf.mxu0  ;;  %v244_v44 = vadd.f32 %v1006_v25, %v243_v30 }
  0x99   :  { %v190_v38 = vadd.f32 %v1006_v25, %v189_v36 }
  0x9b   :  { %v281_v39 = vmax.f32 %v190_v38, 0.0  ;;  %751 = vmatmul.msk.f32.gmra.mxu0 %vm69_vm0, %v47_v37 }
  0x9d   :  { %767 = vmatmul.msk.f32.gmra.mxu1 %vm317_vm1, %v281_v39 }
  0x9f   :  { %v246_v35 = vpop.f32.mrf.mxu2 }
  0xa0   :  { %v192_v41 = vpop.f32.mrf.mxu0  ;;  %v247_v48 = vadd.f32 %v1006_v25, %v246_v35 }
  0xa1   :  { %v193_v42 = vadd.f32 %v1006_v25, %v192_v41 }
  0xa3   :  { %v282_v43 = vmax.f32 %v193_v42, 0.0  ;;  %v298_v42 = vmax.f32 %v241_v40, 0.0 }
  0xa5   :  { %768 = vmatmul.msk.f32.gmra.mxu1 %vm317_vm1, %v282_v43 }
  0xa7   :  { %v249_v41 = vpop.f32.mrf.mxu2 }
  0xa8   :  { %v195_v45 = vpop.f32.mrf.mxu0  ;;  %v250_v52 = vadd.f32 %v1006_v25, %v249_v41 }
  0xa9   :  { %v196_v46 = vadd.f32 %v1006_v25, %v195_v45  ;;  %v299_v45 = vmax.f32 %v244_v44, 0.0 }
  0xab   :  { %v283_v47 = vmax.f32 %v196_v46, 0.0 }
  0xad   :  { %769 = vmatmul.msk.f32.gmra.mxu1 %vm317_vm1, %v283_v47 }
  0xaf   :  { %v252_v47 = vpop.f32.mrf.mxu2 }
  0xb0   :  { %v198_v49 = vpop.f32.mrf.mxu0 }
  0xb1   :  { %v199_v50 = vadd.f32 %v1006_v25, %v198_v49  ;;  %v300_v49 = vmax.f32 %v247_v48, 0.0 }
  0xb3   :  { %v284_v51 = vmax.f32 %v199_v50, 0.0 }
  0xb5   :  { %770 = vmatmul.msk.f32.gmra.mxu1 %vm317_vm1, %v284_v51 }
  0xb7   :  { %v255_v51 = vpop.f32.mrf.mxu2 }
  0xb8   :  { %v201_v53 = vpop.f32.mrf.mxu0 }
  0xb9   :  { %v202_v54 = vadd.f32 %v1006_v25, %v201_v53  ;;  %v301_v53 = vmax.f32 %v250_v52, 0.0 }
  0xbb   :  { %v285_v55 = vmax.f32 %v202_v54, 0.0 }
  0xbd   :  { %771 = vmatmul.msk.f32.gmra.mxu1 %vm317_vm1, %v285_v55  ;;  %v253_v55 = vadd.f32 %v1006_v25, %v252_v47 }
  0xbf   :  { %v258_v56 = vpop.f32.mrf.mxu2 }
  0xc0   :  { %v204_v57 = vpop.f32.mrf.mxu0 }
  0xc1   :  { %v205_v58 = vadd.f32 %v1006_v25, %v204_v57  ;;  %v302_v57 = vmax.f32 %v253_v55, 0.0 }
  0xc3   :  { %v286_v59 = vmax.f32 %v205_v58, 0.0 }
  0xc5   :  { %772 = vmatmul.msk.f32.gmra.mxu1 %vm317_vm1, %v286_v59  ;;  %v256_v59 = vadd.f32 %v1006_v25, %v255_v51 }
  0xc7   :  { %v261_v60 = vpop.f32.mrf.mxu2 }
  0xc8   :  { %v207_v61 = vpop.f32.mrf.mxu0 }
  0xc9   :  { %v208_v62 = vadd.f32 %v1006_v25, %v207_v61  ;;  %v303_v61 = vmax.f32 %v256_v59, 0.0 }
  0xcb   :  { %v287_v63 = vmax.f32 %v208_v62, 0.0 }
  0xcd   :  { %773 = vmatmul.msk.f32.gmra.mxu1 %vm317_vm1, %v287_v63  ;;  %v259_v63 = vadd.f32 %v1006_v25, %v258_v56 }
  0xcf   :  { %v304_v0 = vmax.f32 %v259_v63, 0.0 }
  0xd0   :  { %v210_v1 = vpop.f32.mrf.mxu0 }
  0xd1   :  { %v211_v2 = vadd.f32 %v1006_v25, %v210_v1 }
  0xd3   :  { %v288_v3 = vmax.f32 %v211_v2, 0.0  ;;  %v264_v2 = vpop.f32.mrf.mxu2 }
  0xd5   :  { %774 = vmatmul.msk.f32.gmra.mxu1 %vm317_vm1, %v288_v3  ;;  %v262_v3 = vadd.f32 %v1006_v25, %v261_v60 }
  0xd7   :  { %v305_v4 = vmax.f32 %v262_v3, 0.0 }
  0xd8   :  { %v213_v5 = vpop.f32.mrf.mxu0 }
  0xd9   :  { %v214_v6 = vadd.f32 %v1006_v25, %v213_v5 }
  0xdb   :  { %v289_v7 = vmax.f32 %v214_v6, 0.0  ;;  %v267_v6 = vpop.f32.mrf.mxu2 }
  0xdd   :  { %775 = vmatmul.msk.f32.gmra.mxu1 %vm317_vm1, %v289_v7  ;;  %v265_v7 = vadd.f32 %v1006_v25, %v264_v2 }
  0xdf   :  { %v306_v8 = vmax.f32 %v265_v7, 0.0 }
  0xe0   :  { %v216_v9 = vpop.f32.mrf.mxu0 }
  0xe1   :  { %v217_v10 = vadd.f32 %v1006_v25, %v216_v9 }
  0xe3   :  { %v290_v11 = vmax.f32 %v217_v10, 0.0  ;;  %v268_v10 = vadd.f32 %v1006_v25, %v267_v6 }
  0xe5   :  { %776 = vmatmul.msk.f32.gmra.mxu1 %vm317_vm1, %v290_v11  ;;  %v270_v11 = vpop.f32.mrf.mxu2 }
  0xe8   :  { %v219_v12 = vpop.f32.mrf.mxu0 }
  0xe9   :  { %v220_v13 = vadd.f32 %v1006_v25, %v219_v12  ;;  %v307_v12 = vmax.f32 %v268_v10, 0.0 }
  0xeb   :  { %v291_v14 = vmax.f32 %v220_v13, 0.0 }
  0xed   :  { %777 = vmatmul.msk.f32.gmra.mxu1 %vm317_vm1, %v291_v14  ;;  %v271_v14 = vadd.f32 %v1006_v25, %v270_v11 }
  0xf0   :  { %v222_v15 = vpop.f32.mrf.mxu0 }
  0xf1   :  { %v223_v16 = vadd.f32 %v1006_v25, %v222_v15  ;;  %v273_v15 = vpop.f32.mrf.mxu2 }
  0xf3   :  { %v292_v17 = vmax.f32 %v223_v16, 0.0  ;;  %v308_v16 = vmax.f32 %v271_v14, 0.0 }
  0xf5   :  { %778 = vmatmul.msk.f32.gmra.mxu1 %vm317_vm1, %v292_v17 }
  0xf8   :  { %v225_v18 = vpop.f32.mrf.mxu0 }
  0xf9   :  { %v226_v19 = vadd.f32 %v1006_v25, %v225_v18  ;;  %v274_v18 = vadd.f32 %v1006_v25, %v273_v15 }
  0xfb   :  { %v293_v20 = vmax.f32 %v226_v19, 0.0  ;;  %v309_v19 = vmax.f32 %v274_v18, 0.0 }
  0xfd   :  { %779 = vmatmul.msk.f32.gmra.mxu1 %vm317_vm1, %v293_v20 }
 0x100   :  { %v228_v21 = vpop.f32.mrf.mxu0 }
 0x101   :  { %v229_v22 = vadd.f32 %v1006_v25, %v228_v21  ;;  %v276_v21 = vpop.f32.mrf.mxu2 }
 0x103   :  { %v294_v24 = vmax.f32 %v229_v22, 0.0  ;;  %v277_v22 = vadd.f32 %v1006_v25, %v276_v21 }
 0x105   :  { %780 = vmatmul.msk.f32.gmra.mxu1 %vm317_vm1, %v294_v24  ;;  %v310_v24 = vmax.f32 %v277_v22, 0.0 }
 0x108   :  { %v231_v26 = vpop.f32.mrf.mxu0 }
 0x109   :  { %v232_v27 = vadd.f32 %v1006_v25, %v231_v26 }
 0x10a   :  { %v1097_v28 = vpop.f32.mrf.mxu1 }
 0x10b   :  { %v295_v29 = vmax.f32 %v232_v27, 0.0 }
 0x10d   :  { %781 = vmatmul.msk.f32.gmra.mxu1 %vm317_vm1, %v295_v29 }
 0x110   :  { %v234_v31 = vpop.f32.mrf.mxu0 }
 0x111   :  { %v235_v32 = vadd.f32 %v1006_v25, %v234_v31 }
 0x112   :  { %v1101_v33 = vpop.f32.mrf.mxu1 }
 0x113   :  { %v296_v34 = vmax.f32 %v235_v32, 0.0 }
 0x115   :  { %782 = vmatmul.msk.f32.vlgmr.msra.gmra.mxu3 %vm317_vm1, %v296_v34 }
 0x118   :  { %v237_v36 = vpop.f32.mrf.mxu0 }
 0x119   :  { %v238_v37 = vadd.f32 %v1006_v25, %v237_v36 }
 0x11a   :  { %v1105_v38 = vpop.f32.mrf.mxu1 }
 0x11b   :  { %v297_v39 = vmax.f32 %v238_v37, 0.0 }
 0x11d   :  { %783 = vmatmul.msk.f32.gmra.mxu3 %vm317_vm1, %v297_v39 }
 0x122   :  { %v1109_v43 = vpop.f32.mrf.mxu1 }
 0x125   :  { %784 = vmatmul.msk.f32.gmra.mxu3 %vm317_vm1, %v298_v42 }
 0x12a   :  { %v1113_v46 = vpop.f32.mrf.mxu1 }
 0x12d   :  { %785 = vmatmul.msk.f32.gmra.mxu3 %vm317_vm1, %v299_v45 }
 0x132   :  { %v1117_v50 = vpop.f32.mrf.mxu1 }
 0x133   :  { %v447_v55 = vadd.f32 %v1146_v23, %v1117_v50  ;;  %v438_v50 = vadd.f32 %v1146_v23, %v1105_v38 }
 0x135   :  { %786 = vmatmul.msk.f32.gmra.mxu3 %vm317_vm1, %v300_v49  ;;  %v529_v63 = vmax.f32 %v438_v50, 0.0 }
 0x13a   :  { %v1121_v54 = vpop.f32.mrf.mxu1 }
 0x13b   :  { %v450_v51 = vadd.f32 %v1146_v23, %v1121_v54  ;;  %v441_v54 = vadd.f32 %v1146_v23, %v1109_v43 }
 0x13d   :  { %787 = vmatmul.msk.f32.gmra.mxu3 %vm317_vm1, %v301_v53  ;;  %v533_v56 = vmax.f32 %v450_v51, 0.0 }
 0x142   :  { %v1125_v58 = vpop.f32.mrf.mxu1 }
 0x143   :  { %v453_v48 = vadd.f32 %v1146_v23, %v1125_v58  ;;  %v532_v58 = vmax.f32 %v447_v55, 0.0 }
 0x145   :  { %788 = vmatmul.msk.f32.gmra.mxu3 %vm317_vm1, %v302_v57  ;;  %v534_v52 = vmax.f32 %v453_v48, 0.0  ;;  %v444_v57 = vadd.f32 %v1146_v23, %v1113_v46  ;;  %v435_v46 = vadd.f32 %v1146_v23, %v1101_v33 }
 0x147   :  { %v531_v60 = vmax.f32 %v444_v57, 0.0  ;;  %v528_v43 = vmax.f32 %v435_v46, 0.0 }
 0x14a   :  { %v455_v62 = vpop.f32.mrf.mxu1 }
 0x14b   :  { %v456_v44 = vadd.f32 %v1146_v23, %v455_v62 }
 0x14d   :  { %789 = vmatmul.msk.f32.gmra.mxu3 %vm317_vm1, %v303_v61  ;;  %v535_v49 = vmax.f32 %v456_v44, 0.0  ;;  %v530_v61 = vmax.f32 %v441_v54, 0.0 }
 0x152   :  { %v458_v1 = vpop.f32.mrf.mxu1 }
 0x153   :  { %v459_v41 = vadd.f32 %v1146_v23, %v458_v1 }
 0x155   :  { %790 = vmatmul.msk.f32.gmra.mxu3 %vm317_vm1, %v304_v0  ;;  %v536_v45 = vmax.f32 %v459_v41, 0.0  ;;  %v432_v0 = vadd.f32 %v1146_v23, %v1097_v28 }
 0x157   :  { %v527_v2 = vmax.f32 %v432_v0, 0.0 }
 0x15a   :  { %v461_v5 = vpop.f32.mrf.mxu1 }
 0x15b   :  { %v462_v37 = vadd.f32 %v1146_v23, %v461_v5 }
 0x15d   :  { %791 = vmatmul.msk.f32.gmra.mxu3 %vm317_vm1, %v305_v4  ;;  %v537_v42 = vmax.f32 %v462_v37, 0.0 }
 0x162   :  { %v464_v9 = vpop.f32.mrf.mxu1 }
 0x163   :  { %v465_v35 = vadd.f32 %v1146_v23, %v464_v9 }
 0x165   :  { %792 = vmatmul.msk.f32.gmra.mxu3 %vm317_vm1, %v306_v8  ;;  %v538_v39 = vmax.f32 %v465_v35, 0.0 }
 0x16a   :  { %v467_v13 = vpop.f32.mrf.mxu1 }
 0x16b   :  { %v468_v25 = vadd.f32 %v1146_v23, %v467_v13 }
 0x16d   :  { %793 = vmatmul.msk.f32.gmra.mxu3 %vm317_vm1, %v307_v12  ;;  %v539_v36 = vmax.f32 %v468_v25, 0.0  ;;  %v868_v25 = vmov 0  }
 0x16e   :  { %839 = vset.pattern.permute.xlu0 %v868_v25 }
 0x172   :  { %v470_v17 = vpop.f32.mrf.mxu1 }
 0x173   :  { %v471_v31 = vadd.f32 %v1146_v23, %v470_v17 }
 0x175   :  { %794 = vmatmul.msk.f32.gmra.mxu3 %vm317_vm1, %v308_v16  ;;  %v540_v34 = vmax.f32 %v471_v31, 0.0 }
 0x17a   :  { %v473_v20 = vpop.f32.mrf.mxu1 }
 0x17b   :  { %v474_v29 = vadd.f32 %v1146_v23, %v473_v20 }
 0x17d   :  { %795 = vmatmul.msk.f32.gmra.mxu3 %vm317_vm1, %v309_v19  ;;  %v541_v32 = vmax.f32 %v474_v29, 0.0  ;;  %v559_v29 = vld [vmem:[%s1246_s5] sm:$0x1] }
 0x182   :  { %v476_v26 = vpop.f32.mrf.mxu1 }
 0x183   :  { %v477_v27 = vadd.f32 %v1146_v23, %v476_v26 }
 0x185   :  { %v542_v30 = vmax.f32 %v477_v27, 0.0  ;;  %796 = vmatmul.msk.f32.gmra.mxu3 %vm317_vm1, %v310_v24 }
 0x187   :  { %797 = vmatpush.xpose.msk.msrb.mxu2 %vm317_vm1, %v542_v30 }
 0x18b   :  { %798 = vmatpush.xpose.msk.msrb.mxu2 %vm317_vm1, %v541_v32  ;;  %v560_v32 = vld [vmem:[#allocation2] sm:$0x1] }
 0x18c   :  { %563 = vperm.xlu0 %839, %v560_v32  }
 0x18f   :  { %799 = vmatpush.xpose.msk.msrb.mxu2 %vm317_vm1, %v540_v34 }
 0x193   :  { %800 = vmatpush.xpose.msk.msrb.mxu2 %vm317_vm1, %v539_v36 }
 0x197   :  { %801 = vmatpush.xpose.msk.msrb.mxu2 %vm317_vm1, %v538_v39 }
 0x198   :  { %v1160_v40 = vpop.f32.mrf.mxu3 }
 0x19b   :  { %802 = vmatpush.xpose.msk.msrb.mxu2 %vm317_vm1, %v537_v42 }
 0x19f   :  { %803 = vmatpush.xpose.msk.msrb.mxu2 %vm317_vm1, %v536_v45  ;;  %v483_v45 = vadd.f32 %v1146_v23, %v1160_v40 }
 0x1a0   :  { %v1166_v47 = vpop.f32.mrf.mxu3 }
 0x1a1   :  { %v486_v42 = vadd.f32 %v1146_v23, %v1166_v47 }
 0x1a3   :  { %804 = vmatpush.xpose.msk.msrb.mxu2 %vm317_vm1, %v535_v49  ;;  %v545_v48 = vmax.f32 %v486_v42, 0.0  ;;  %v479_v49 = vpop.f32.mrf.mxu1 }
 0x1a4   :  { %v480_v51 = vadd.f32 %v1146_v23, %v479_v49 }
 0x1a7   :  { %805 = vmatpush.xpose.msk.msrb.mxu2 %vm317_vm1, %v534_v52  ;;  %v544_v52 = vmax.f32 %v483_v45, 0.0 }
 0x1a8   :  { %v1174_v53 = vpop.f32.mrf.mxu3 }
 0x1a9   :  { %v489_v39 = vadd.f32 %v1146_v23, %v1174_v53  ;;  %v543_v53 = vmax.f32 %v480_v51, 0.0 }
 0x1ab   :  { %806 = vmatpush.xpose.msk.msrb.mxu2 %vm317_vm1, %v533_v56  ;;  %v546_v44 = vmax.f32 %v489_v39, 0.0  ;;  %v712_v56 = vlaneseq }
 0x1ad   :  { %vm714_vm3 = vcmp.lt.s32.totalorder %v712_v56, 256 }
 0x1af   :  { %807 = vmatpush.xpose.msk.msrb.mxu2 %vm317_vm1, %v532_v58 }
 0x1b0   :  { %v1182_v59 = vpop.f32.mrf.mxu3 }
 0x1b1   :  { %v492_v36 = vadd.f32 %v1146_v23, %v1182_v59 }
 0x1b3   :  { %808 = vmatpush.xpose.msk.msrb.mxu2 %vm317_vm1, %v531_v60  ;;  %v547_v41 = vmax.f32 %v492_v36, 0.0 }
 0x1b7   :  { %809 = vmatpush.xpose.msk.msrb.mxu2 %vm317_vm1, %v530_v61 }
 0x1b8   :  { %v494_v62 = vpop.f32.mrf.mxu3 }
 0x1b9   :  { %v495_v34 = vadd.f32 %v1146_v23, %v494_v62 }
 0x1bb   :  { %810 = vmatpush.xpose.msk.msrb.mxu2 %vm317_vm1, %v529_v63  ;;  %v548_v37 = vmax.f32 %v495_v34, 0.0 }
 0x1bf   :  { %811 = vmatpush.xpose.msk.msrb.mxu2 %vm317_vm1, %v528_v43 }
 0x1c0   :  { %v497_v1 = vpop.f32.mrf.mxu3 }
 0x1c1   :  { %v498_v30 = vadd.f32 %v1146_v23, %v497_v1 }
 0x1c3   :  { %812 = vmatpush.xpose.msk.msrb.mxu2 %vm317_vm1, %v527_v2  ;;  %v549_v35 = vmax.f32 %v498_v30, 0.0 }
 0x1c6   :  { %813 = vmatmul.msk.f32.vlgmr.msrb.gmra.mxu2 %vm317_vm1, %v559_v29 }
 0x1c8   :  { %v500_v38 = vpop.f32.mrf.mxu3 }
 0x1c9   :  { %v501_v26 = vadd.f32 %v1146_v23, %v500_v38 }
 0x1cb   :  { %v550_v31 = vmax.f32 %v501_v26, 0.0 }
 0x1d0   :  { %v503_v3 = vpop.f32.mrf.mxu3 }
 0x1d1   :  { %v504_v22 = vadd.f32 %v1146_v23, %v503_v3 }
 0x1d3   :  { %v551_v27 = vmax.f32 %v504_v22, 0.0 }
 0x1d8   :  { %v506_v4 = vpop.f32.mrf.mxu3 }
 0x1d9   :  { %v507_v20 = vadd.f32 %v1146_v23, %v506_v4 }
 0x1db   :  { %v552_v24 = vmax.f32 %v507_v20, 0.0 }
 0x1e0   :  { %v509_v5 = vpop.f32.mrf.mxu3 }
 0x1e1   :  { %v510_v18 = vadd.f32 %v1146_v23, %v509_v5 }
 0x1e3   :  { %v553_v21 = vmax.f32 %v510_v18, 0.0 }
 0x1e8   :  { %v512_v6 = vpop.f32.mrf.mxu3 }
 0x1e9   :  { %v513_v16 = vadd.f32 %v1146_v23, %v512_v6 }
 0x1eb   :  { %v554_v19 = vmax.f32 %v513_v16, 0.0 }
 0x1f0   :  { %v515_v7 = vpop.f32.mrf.mxu3 }
 0x1f1   :  { %v516_v14 = vadd.f32 %v1146_v23, %v515_v7 }
 0x1f3   :  { %v555_v17 = vmax.f32 %v516_v14, 0.0 }
 0x1f8   :  { %v518_v33 = vpop.f32.mrf.mxu3 }
 0x1f9   :  { %v519_v12 = vadd.f32 %v1146_v23, %v518_v33 }
 0x1fb   :  { %v556_v15 = vmax.f32 %v519_v12, 0.0 }
 0x1fe   :  { %v564_v47 = vpop.permute.xlu0 %563 }
 0x1ff   :  { %v566_v55 = vperm.slane %v564_v47, 0 }
 0x200   :  { %v521_v8 = vpop.f32.mrf.mxu3 }
 0x201   :  { %v522_v28 = vadd.f32 %v1146_v23, %v521_v8 }
 0x203   :  { %v557_v13 = vmax.f32 %v522_v28, 0.0 }
 0x208   :  { %v524_v9 = vpop.f32.mrf.mxu3 }
 0x209   :  { %v525_v10 = vadd.f32 %v1146_v23, %v524_v9 }
 0x20b   :  { %v558_v11 = vmax.f32 %v525_v10, 0.0 }
 0x20d   :  { %814 = vmatpush.xpose.msk.msrb.mxu3 %vm317_vm1, %v558_v11 }
 0x211   :  { %815 = vmatpush.xpose.msk.msrb.mxu3 %vm317_vm1, %v557_v13 }
 0x215   :  { %816 = vmatpush.xpose.msk.msrb.mxu3 %vm317_vm1, %v556_v15 }
 0x219   :  { %817 = vmatpush.xpose.msk.msrb.mxu3 %vm317_vm1, %v555_v17 }
 0x21d   :  { %818 = vmatpush.xpose.msk.msrb.mxu3 %vm317_vm1, %v554_v19 }
 0x221   :  { %819 = vmatpush.xpose.msk.msrb.mxu3 %vm317_vm1, %v553_v21 }
 0x225   :  { %820 = vmatpush.xpose.msk.msrb.mxu3 %vm317_vm1, %v552_v24 }
 0x229   :  { %821 = vmatpush.xpose.msk.msrb.mxu3 %vm317_vm1, %v551_v27 }
 0x22d   :  { %822 = vmatpush.xpose.msk.msrb.mxu3 %vm317_vm1, %v550_v31 }
 0x231   :  { %823 = vmatpush.xpose.msk.msrb.mxu3 %vm317_vm1, %v549_v35 }
 0x235   :  { %824 = vmatpush.xpose.msk.msrb.mxu3 %vm317_vm1, %v548_v37 }
 0x239   :  { %825 = vmatpush.xpose.msk.msrb.mxu3 %vm317_vm1, %v547_v41 }
 0x23d   :  { %826 = vmatpush.xpose.msk.msrb.mxu3 %vm317_vm1, %v546_v44 }
 0x241   :  { %827 = vmatpush.xpose.msk.msrb.mxu3 %vm317_vm1, %v545_v48 }
 0x245   :  { %828 = vmatpush.xpose.msk.msrb.mxu3 %vm317_vm1, %v544_v52 }
 0x249   :  { %829 = vmatpush.xpose.msk.msrb.mxu3 %vm317_vm1, %v543_v53  ;;  %v683_v58 = vpop.f32.mrf.mxu2 }
 0x24a   :  { %v684_v54 = vadd.f32 %v683_v58, %v566_v55 }
 0x24c   :  { %830 = vmatmul.msk.f32.vlgmr.msrb.gmra.mxu3 %vm317_vm1, %v559_v29 }
 0x2cf   :  { %v703_v57 = vpop.f32.mrf.mxu3 }
 0x2d0   :  { %v704_v40 = vadd.f32 %v703_v57, %v566_v55 }
 0x2d2   :  { %v708_v59 = vrot.slane %v704_v40, 7 }
 0x2d4   :  { %v710_v60 = vsel %vm709_vm2, %v684_v54, %v708_v59 }
 0x2d5   :  { %716 = vst.msk [vmem:[#allocation3] sm:$0x3] %vm714_vm3, %v710_v60 }
 0x2d6   :  { %720 = vsyncadd [#allocation4], 16  ;;  %s724_s2 = sshll.u32 %s1248_s7, 4  ;;  %s869_s29 = smov [#allocation3]   ;;  %s725_s2 = int_to_ptr.hbm [resolvable:$true] %s724_s2 }
 0x2d7   :  { %s722_s30 = sshll.u32 %s869_s29, 4  ;;  %s723_s30 = int_to_ptr.vmem [resolvable:$true] %s722_s30 }
 0x2d8   :  { %727 = dma.vmem_to_hbm [thread:$0]  %s723_s30, 16, %s725_s2, [#allocation4]  }
 0x2d9   :  { %866 = dma.done.wait [#allocation4], 32  }
 0x2da   :  { %867 = vsyncadd [#allocation4], 4294967264 }
 0x2db   :  { %732 = vsyncpa [#allocation4], 1 }

</bundles_post_ra>
